<compile_context>
chip_gen: v7x
topology: tpu7x:2x2x1
jax: 0.10.0
libtpu: 0.0.40
codegen_flags: <defaults>
</compile_context>

<pallas_src>
import functools

import jax
import jax.numpy as jnp
from jax.experimental import pallas as pl
from jax.experimental.pallas import tpu as pltpu


def _block7_kernel(x_ref, wqkv_ref, wo_ref, bo_ref, w1_ref, b1_ref, w2_ref,
                   b2_ref, o_ref, *, h):
    f32, bf16 = jnp.float32, jnp.bfloat16

    x = x_ref[...]                                     # (bb, T, dm) f32
    bb, T, dm = x.shape
    dk = dm // h

    # ---- RMSNorm 1:  x / sqrt(mean(x^2, -1))  (no eps, as in the module) ----
    xn1 = x * jax.lax.rsqrt(jnp.mean(x * x, axis=-1, keepdims=True))

    # ---- fused K|Q|V projection for all heads in one MXU pass ----
    x2d = xn1.reshape(bb * T, dm).astype(bf16)
    kqv = jnp.dot(x2d, wqkv_ref[...], preferred_element_type=f32)  # (bb*T, 3*dm)
    k = jnp.maximum(kqv[:, 0 * dm:1 * dm], 0.0).reshape(bb, T, dm)  # ReLU keys
    q = jnp.maximum(kqv[:, 1 * dm:2 * dm], 0.0).reshape(bb, T, dm)  # ReLU queries
    v = kqv[:, 2 * dm:3 * dm].reshape(bb, T, dm)

    # exp(q+k) factored; fold dk**-0.5 into exp(q) once.
    eq = (jnp.exp(q) * (float(dk) ** -0.5)).astype(bf16)
    ek = jnp.exp(k).astype(bf16)
    vb = v.astype(bf16)

    rows = jax.lax.broadcasted_iota(jnp.int32, (T, T), 0)
    cols = jax.lax.broadcasted_iota(jnp.int32, (T, T), 1)
    causal = (cols <= rows)[None]                      # (1, T, T)

    head_outs = []
    for i in range(h):                                 # static unroll, h small
        lo, hi = i * dk, (i + 1) * dk
        # wei[b,i,j] = sum_d exp(q+k) * dk**-0.5, now as an MXU matmul.
        wei = jnp.einsum('bqd,bkd->bqk', eq[:, :, lo:hi], ek[:, :, lo:hi],
                         preferred_element_type=f32)   # (bb, T, T)
        wei = jnp.where(causal, wei, -jnp.inf)         # causal masked_fill
        # F.normalize(p=1, dim=-1): wei / max(sum|wei|, 1e-12)
        denom = jnp.maximum(jnp.sum(jnp.abs(wei), axis=-1, keepdims=True), 1e-12)
        inv = pl.reciprocal(denom, approx=True)        # EUP slot, not VALU divide
        inv = jnp.where(jnp.isinf(denom), 0.0, inv)    # keep 1/inf == 0 exactly
        wei = wei * inv
        # TODO(synk): nn.Dropout on wei skipped (identity) -- inference semantics.
        head_outs.append(jnp.einsum('bqk,bkd->bqd', wei.astype(bf16),
                                    vb[:, :, lo:hi],
                                    preferred_element_type=f32))  # (bb, T, dk)

    att = jnp.concatenate(head_outs, axis=-1).reshape(bb * T, dm)  # head concat

    # ---- W_o projection (+bias) and first residual ----
    proj = (jnp.dot(att.astype(bf16), wo_ref[...], preferred_element_type=f32)
            + bo_ref[...])
    x1 = x + proj.reshape(bb, T, dm)

    # ---- RMSNorm 2 + FeedForward (Linear -> ReLU -> Linear) + residual ----
    xn2 = x1 * jax.lax.rsqrt(jnp.mean(x1 * x1, axis=-1, keepdims=True))
    z = xn2.reshape(bb * T, dm).astype(bf16)
    hid = jnp.maximum(
        jnp.dot(z, w1_ref[...], preferred_element_type=f32) + b1_ref[...], 0.0)
    ffn = (jnp.dot(hid.astype(bf16), w2_ref[...], preferred_element_type=f32)
           + b2_ref[...])
    # TODO(synk): nn.Dropout in FFN / MHA output skipped (identity) -- eval mode.
    out = x1 + ffn.reshape(bb, T, dm)

    o_ref[...] = out.astype(o_ref.dtype)


def _batch_block(B):
    """Largest divisor of B that still leaves >=2 grid steps (v7x: 2 TCs)."""
    if B <= 1:
        return 1
    best = 1
    for d in range(1, B // 2 + 1):
        if B % d == 0:
            best = d
    return best


def block7_forward(x, params, *, h):
    """x: (B, T, dm) f32; params hold torch-shaped (out, in) weights."""
    B, T, dm = x.shape
    dk = dm // h
    assert dk * h == dm

    # Fuse all per-head K/Q/V weights into a single (dm, 3*dm) matrix:
    # columns [0:dm]=K (head-major), [dm:2dm]=Q, [2dm:3dm]=V.
    def _heads_t(w):  # (h, dk, dm) -> (dm, h*dk), column block i == w[i].T
        return jnp.transpose(w, (2, 0, 1)).reshape(dm, h * dk)

    wqkv = jnp.concatenate(
        [_heads_t(params['wk']), _heads_t(params['wq']), _heads_t(params['wv'])],
        axis=1).astype(jnp.bfloat16)                                # (dm, 3*dm)
    wo_t = params['wo'].T.astype(jnp.bfloat16)                      # (dm, dm)
    w1_t = params['w1'].T.astype(jnp.bfloat16)                      # (dm, 4*dm)
    w2_t = params['w2'].T.astype(jnp.bfloat16)                      # (4*dm, dm)
    bo = params['bo'].reshape(1, dm).astype(jnp.float32)
    b1 = params['b1'].reshape(1, 4 * dm).astype(jnp.float32)
    b2 = params['b2'].reshape(1, dm).astype(jnp.float32)

    bb = _batch_block(B)
    kernel = functools.partial(_block7_kernel, h=h)

    return pl.pallas_call(
        kernel,
        out_shape=jax.ShapeDtypeStruct((B, T, dm), jnp.float32),
        grid=(B // bb,),
        in_specs=[
            pl.BlockSpec((bb, T, dm), lambda b: (b, 0, 0)),        # x
            pl.BlockSpec((dm, 3 * dm), lambda b: (0, 0)),          # fused Wk|Wq|Wv
            pl.BlockSpec((dm, dm), lambda b: (0, 0)),              # W_o^T
            pl.BlockSpec((1, dm), lambda b: (0, 0)),               # b_o
            pl.BlockSpec((dm, 4 * dm), lambda b: (0, 0)),          # W1^T
            pl.BlockSpec((1, 4 * dm), lambda b: (0, 0)),           # b1
            pl.BlockSpec((4 * dm, dm), lambda b: (0, 0)),          # W2^T
            pl.BlockSpec((1, dm), lambda b: (0, 0)),               # b2
        ],
        out_specs=pl.BlockSpec((bb, T, dm), lambda b: (b, 0, 0)),
        compiler_params=pltpu.CompilerParams(
            dimension_semantics=("parallel",)),
    )(x.astype(jnp.float32), wqkv, wo_t, bo, w1_t, b1, w2_t, b2)


def _reference_block7(x, params, *, h):
    """Pure-JAX f32 mirror of the torch Block7.forward (literal semantics)."""
    B, T, dm = x.shape
    dk = dm // h

    def rms(z):
        return z / jnp.sqrt(jnp.mean(z * z, axis=-1, keepdims=True))

    tril = jnp.tril(jnp.ones((T, T), jnp.float32))
    xn = rms(x)
    heads = []
    for i in range(h):
        k = jax.nn.relu(xn @ params['wk'][i].T)
        q = jax.nn.relu(xn @ params['wq'][i].T)
        v = xn @ params['wv'][i].T
        qk = q[:, :, None, :] + k[:, None, :, :]
        wei = jnp.sum(jnp.exp(qk), axis=-1) * (float(dk) ** -0.5)
        wei = jnp.where(tril == 0, -jnp.inf, wei)
        denom = jnp.maximum(jnp.sum(jnp.abs(wei), axis=-1, keepdims=True), 1e-12)
        wei = wei / denom
        heads.append(wei @ v)
    att = jnp.concatenate(heads, axis=-1) @ params['wo'].T + params['bo']
    x1 = x + att
    hid = jax.nn.relu(rms(x1) @ params['w1'].T + params['b1'])
    return x1 + hid @ params['w2'].T + params['b2']


if __name__ == "__main__":
    # Small shapes consistent with Block7: dm=32, h=4 -> dk=dv=8, T=8 <= 256.
    B, T, dm, h = 2, 8, 32, 4
    dk = dm // h

    key = jax.random.PRNGKey(0)
    ks = jax.random.split(key, 10)

    x = jax.random.normal(ks[0], (B, T, dm), jnp.float32) * 0.5
    s = (1.0 / dm) ** 0.5
    s2 = (1.0 / (4 * dm)) ** 0.5
    params = {
        'wk': jax.random.uniform(ks[1], (h, dk, dm), jnp.float32, -s, s),
        'wq': jax.random.uniform(ks[2], (h, dk, dm), jnp.float32, -s, s),
        'wv': jax.random.uniform(ks[3], (h, dk, dm), jnp.float32, -s, s),
        'wo': jax.random.uniform(ks[4], (dm, dm), jnp.float32, -s, s),
        'bo': jax.random.uniform(ks[5], (dm,), jnp.float32, -s, s),
        'w1': jax.random.uniform(ks[6], (4 * dm, dm), jnp.float32, -s, s),
        'b1': jax.random.uniform(ks[7], (4 * dm,), jnp.float32, -s, s),
        'w2': jax.random.uniform(ks[8], (dm, 4 * dm), jnp.float32, -s2, s2),
        'b2': jax.random.uniform(ks[9], (dm,), jnp.float32, -s2, s2),
    }

    out = block7_forward(x, params, h=h)
    out = jax.block_until_ready(out)
    assert out.shape == (B, T, dm)

    ref = _reference_block7(x, params, h=h)
    # NaN rows (all query positions except the last) are identical in both —
    # faithful to the torch masked_fill(-inf) + L1-normalize behaviour.
    assert bool(jnp.allclose(out, ref, rtol=2e-2, atol=2e-2, equal_nan=True)), \
        "kernel output mismatch vs. JAX reference"

    print("KERNEL_OK")
</pallas_src>

<mosaic_0001>
module attributes {stable_mosaic.version = 11 : i64} {
  func.func @_block7_kernel(%arg0: i32, %arg1: memref<1x8x32xf32, #tpu.memory_space<vmem>>, %arg2: memref<32x96xbf16, #tpu.memory_space<vmem>>, %arg3: memref<32x32xbf16, #tpu.memory_space<vmem>>, %arg4: memref<1x32xf32, #tpu.memory_space<vmem>>, %arg5: memref<32x128xbf16, #tpu.memory_space<vmem>>, %arg6: memref<1x128xf32, #tpu.memory_space<vmem>>, %arg7: memref<128x32xbf16, #tpu.memory_space<vmem>>, %arg8: memref<1x32xf32, #tpu.memory_space<vmem>>, %arg9: memref<1x8x32xf32, #tpu.memory_space<vmem>>) attributes {dimension_semantics = [#tpu.dimension_semantics<parallel>], iteration_bounds = array<i64: 2>, scalar_prefetch = 0 : i64, scratch_operands = 0 : i64, tpu.core_type = #tpu.core_type<tc>, window_params = [{transform_indices = @transform_0, window_bounds = array<i64: 1, 8, 32>}, {pipeline_mode = #tpu.pipeline_mode<synchronous>, transform_indices = @transform_1, window_bounds = array<i64: 32, 96>}, {pipeline_mode = #tpu.pipeline_mode<synchronous>, transform_indices = @transform_2, window_bounds = array<i64: 32, 32>}, {pipeline_mode = #tpu.pipeline_mode<synchronous>, transform_indices = @transform_3, window_bounds = array<i64: 1, 32>}, {pipeline_mode = #tpu.pipeline_mode<synchronous>, transform_indices = @transform_4, window_bounds = array<i64: 32, 128>}, {pipeline_mode = #tpu.pipeline_mode<synchronous>, transform_indices = @transform_5, window_bounds = array<i64: 1, 128>}, {pipeline_mode = #tpu.pipeline_mode<synchronous>, transform_indices = @transform_6, window_bounds = array<i64: 128, 32>}, {pipeline_mode = #tpu.pipeline_mode<synchronous>, transform_indices = @transform_7, window_bounds = array<i64: 1, 32>}, {transform_indices = @transform_8, window_bounds = array<i64: 1, 8, 32>}]} {
    %c0 = arith.constant 0 : index
    %c0_0 = arith.constant 0 : index
    %c0_1 = arith.constant 0 : index
    %0 = vector.load %arg1[%c0, %c0_0, %c0_1] : memref<1x8x32xf32, #tpu.memory_space<vmem>>, vector<1x8x32xf32>
    %1 = arith.mulf %0, %0 : vector<1x8x32xf32>
    %cst = arith.constant dense<0.000000e+00> : vector<1x8xf32>
    %2 = vector.multi_reduction <add>, %1, %cst [2] : vector<1x8x32xf32> to vector<1x8xf32>
    %3 = vector.shape_cast %2 : vector<1x8xf32> to vector<1x8x1xf32>
    %cst_2 = arith.constant 3.200000e+01 : f32
    %4 = vector.broadcast %cst_2 : f32 to vector<1x8x1xf32>
    %5 = arith.divf %3, %4 : vector<1x8x1xf32>
    %6 = math.rsqrt %5 : vector<1x8x1xf32>
    %7 = vector.broadcast %6 : vector<1x8x1xf32> to vector<1x8x32xf32>
    %8 = arith.mulf %0, %7 : vector<1x8x32xf32>
    %9 = vector.shape_cast %8 : vector<1x8x32xf32> to vector<8x32xf32>
    %10 = arith.truncf %9 : vector<8x32xf32> to vector<8x32xbf16>
    %c0_3 = arith.constant 0 : index
    %c0_4 = arith.constant 0 : index
    %11 = vector.load %arg2[%c0_3, %c0_4] : memref<32x96xbf16, #tpu.memory_space<vmem>>, vector<32x96xbf16>
    %cst_5 = arith.constant dense<0.000000e+00> : vector<8x96xf32>
    %12 = tpu.matmul %10, %11, %cst_5 {dimension_numbers = #tpu.dot_dimension_numbers<[1], [0], [0], [1], [0, 0, 1, 1], [], []>} : vector<8x32xbf16>, vector<32x96xbf16>, vector<8x96xf32> -> vector<8x96xf32>
    %13 = vector.extract_strided_slice %12 {offsets = [0, 0], sizes = [8, 32], strides = [1, 1]} : vector<8x96xf32> to vector<8x32xf32>
    %cst_6 = arith.constant 0.000000e+00 : f32
    %14 = vector.broadcast %cst_6 : f32 to vector<8x32xf32>
    %15 = arith.maximumf %13, %14 : vector<8x32xf32>
    %16 = vector.shape_cast %15 : vector<8x32xf32> to vector<1x8x32xf32>
    %17 = vector.extract_strided_slice %12 {offsets = [0, 32], sizes = [8, 32], strides = [1, 1]} : vector<8x96xf32> to vector<8x32xf32>
    %cst_7 = arith.constant 0.000000e+00 : f32
    %18 = vector.broadcast %cst_7 : f32 to vector<8x32xf32>
    %19 = arith.maximumf %17, %18 : vector<8x32xf32>
    %20 = vector.shape_cast %19 : vector<8x32xf32> to vector<1x8x32xf32>
    %21 = vector.extract_strided_slice %12 {offsets = [0, 64], sizes = [8, 32], strides = [1, 1]} : vector<8x96xf32> to vector<8x32xf32>
    %22 = vector.shape_cast %21 : vector<8x32xf32> to vector<1x8x32xf32>
    %23 = math.exp %20 : vector<1x8x32xf32>
    %cst_8 = arith.constant 0.353553385 : f32
    %24 = vector.broadcast %cst_8 : f32 to vector<1x8x32xf32>
    %25 = arith.mulf %23, %24 : vector<1x8x32xf32>
    %26 = arith.truncf %25 : vector<1x8x32xf32> to vector<1x8x32xbf16>
    %27 = math.exp %16 : vector<1x8x32xf32>
    %28 = arith.truncf %27 : vector<1x8x32xf32> to vector<1x8x32xbf16>
    %29 = arith.truncf %22 : vector<1x8x32xf32> to vector<1x8x32xbf16>
    %30 = tpu.iota {dimensions = array<i32: 0>} : vector<8x8xi32>
    %31 = tpu.iota {dimensions = array<i32: 1>} : vector<8x8xi32>
    %32 = arith.cmpi sle, %31, %30 : vector<8x8xi32>
    %33 = vector.shape_cast %32 : vector<8x8xi1> to vector<1x8x8xi1>
    %34 = vector.extract_strided_slice %26 {offsets = [0, 0, 0], sizes = [1, 8, 8], strides = [1, 1, 1]} : vector<1x8x32xbf16> to vector<1x8x8xbf16>
    %35 = vector.extract_strided_slice %28 {offsets = [0, 0, 0], sizes = [1, 8, 8], strides = [1, 1, 1]} : vector<1x8x32xbf16> to vector<1x8x8xbf16>
    "tpu.trace_start"() <{level = 10 : i32, message = "bqd,bkd->bqk"}> : () -> ()
    %cst_9 = arith.constant dense<0.000000e+00> : vector<1x8x8xf32>
    %36 = tpu.matmul %34, %35, %cst_9 {dimension_numbers = #tpu.dot_dimension_numbers<[2], [2], [1], [1], [0, 0, 0, 1, 1, 1], [0], [0]>} : vector<1x8x8xbf16>, vector<1x8x8xbf16>, vector<1x8x8xf32> -> vector<1x8x8xf32>
    %cst_10 = arith.constant 0xFF800000 : f32
    "tpu.trace_stop"() : () -> ()
    %37 = vector.broadcast %cst_10 : f32 to vector<1x8x8xf32>
    %38 = arith.select %33, %36, %37 : vector<1x8x8xi1>, vector<1x8x8xf32>
    %39 = math.absf %38 : vector<1x8x8xf32>
    %cst_11 = arith.constant dense<0.000000e+00> : vector<1x8xf32>
    %40 = vector.multi_reduction <add>, %39, %cst_11 [2] : vector<1x8x8xf32> to vector<1x8xf32>
    %41 = vector.shape_cast %40 : vector<1x8xf32> to vector<1x8x1xf32>
    %cst_12 = arith.constant 9.99999996E-13 : f32
    %42 = vector.broadcast %cst_12 : f32 to vector<1x8x1xf32>
    %43 = arith.maximumf %41, %42 : vector<1x8x1xf32>
    %44 = tpu.reciprocal %43 {approx = true} : vector<1x8x1xf32> -> vector<1x8x1xf32>
    %45 = math.absf %43 : vector<1x8x1xf32>
    %cst_13 = arith.constant 0x7F800000 : f32
    %46 = vector.broadcast %cst_13 : f32 to vector<1x8x1xf32>
    %47 = arith.cmpf oeq, %45, %46 : vector<1x8x1xf32>
    %cst_14 = arith.constant 0.000000e+00 : f32
    %48 = vector.broadcast %cst_14 : f32 to vector<1x8x1xf32>
    %49 = arith.select %47, %48, %44 : vector<1x8x1xi1>, vector<1x8x1xf32>
    %50 = vector.broadcast %49 : vector<1x8x1xf32> to vector<1x8x8xf32>
    %51 = arith.mulf %38, %50 : vector<1x8x8xf32>
    %52 = arith.truncf %51 : vector<1x8x8xf32> to vector<1x8x8xbf16>
    %53 = vector.extract_strided_slice %29 {offsets = [0, 0, 0], sizes = [1, 8, 8], strides = [1, 1, 1]} : vector<1x8x32xbf16> to vector<1x8x8xbf16>
    "tpu.trace_start"() <{level = 10 : i32, message = "bqk,bkd->bqd"}> : () -> ()
    %cst_15 = arith.constant dense<0.000000e+00> : vector<1x8x8xf32>
    %54 = tpu.matmul %52, %53, %cst_15 {dimension_numbers = #tpu.dot_dimension_numbers<[2], [1], [1], [2], [0, 0, 0, 1, 1, 2], [0], [0]>} : vector<1x8x8xbf16>, vector<1x8x8xbf16>, vector<1x8x8xf32> -> vector<1x8x8xf32>
    "tpu.trace_stop"() : () -> ()
    %55 = vector.extract_strided_slice %26 {offsets = [0, 0, 8], sizes = [1, 8, 8], strides = [1, 1, 1]} : vector<1x8x32xbf16> to vector<1x8x8xbf16>
    %56 = vector.extract_strided_slice %28 {offsets = [0, 0, 8], sizes = [1, 8, 8], strides = [1, 1, 1]} : vector<1x8x32xbf16> to vector<1x8x8xbf16>
    "tpu.trace_start"() <{level = 10 : i32, message = "bqd,bkd->bqk"}> : () -> ()
    %cst_16 = arith.constant dense<0.000000e+00> : vector<1x8x8xf32>
    %57 = tpu.matmul %55, %56, %cst_16 {dimension_numbers = #tpu.dot_dimension_numbers<[2], [2], [1], [1], [0, 0, 0, 1, 1, 1], [0], [0]>} : vector<1x8x8xbf16>, vector<1x8x8xbf16>, vector<1x8x8xf32> -> vector<1x8x8xf32>
    %cst_17 = arith.constant 0xFF800000 : f32
    "tpu.trace_stop"() : () -> ()
    %58 = vector.broadcast %cst_17 : f32 to vector<1x8x8xf32>
    %59 = arith.select %33, %57, %58 : vector<1x8x8xi1>, vector<1x8x8xf32>
    %60 = math.absf %59 : vector<1x8x8xf32>
    %cst_18 = arith.constant dense<0.000000e+00> : vector<1x8xf32>
    %61 = vector.multi_reduction <add>, %60, %cst_18 [2] : vector<1x8x8xf32> to vector<1x8xf32>
    %62 = vector.shape_cast %61 : vector<1x8xf32> to vector<1x8x1xf32>
    %cst_19 = arith.constant 9.99999996E-13 : f32
    %63 = vector.broadcast %cst_19 : f32 to vector<1x8x1xf32>
    %64 = arith.maximumf %62, %63 : vector<1x8x1xf32>
    %65 = tpu.reciprocal %64 {approx = true} : vector<1x8x1xf32> -> vector<1x8x1xf32>
    %66 = math.absf %64 : vector<1x8x1xf32>
    %cst_20 = arith.constant 0x7F800000 : f32
    %67 = vector.broadcast %cst_20 : f32 to vector<1x8x1xf32>
    %68 = arith.cmpf oeq, %66, %67 : vector<1x8x1xf32>
    %cst_21 = arith.constant 0.000000e+00 : f32
    %69 = vector.broadcast %cst_21 : f32 to vector<1x8x1xf32>
    %70 = arith.select %68, %69, %65 : vector<1x8x1xi1>, vector<1x8x1xf32>
    %71 = vector.broadcast %70 : vector<1x8x1xf32> to vector<1x8x8xf32>
    %72 = arith.mulf %59, %71 : vector<1x8x8xf32>
    %73 = arith.truncf %72 : vector<1x8x8xf32> to vector<1x8x8xbf16>
    %74 = vector.extract_strided_slice %29 {offsets = [0, 0, 8], sizes = [1, 8, 8], strides = [1, 1, 1]} : vector<1x8x32xbf16> to vector<1x8x8xbf16>
    "tpu.trace_start"() <{level = 10 : i32, message = "bqk,bkd->bqd"}> : () -> ()
    %cst_22 = arith.constant dense<0.000000e+00> : vector<1x8x8xf32>
    %75 = tpu.matmul %73, %74, %cst_22 {dimension_numbers = #tpu.dot_dimension_numbers<[2], [1], [1], [2], [0, 0, 0, 1, 1, 2], [0], [0]>} : vector<1x8x8xbf16>, vector<1x8x8xbf16>, vector<1x8x8xf32> -> vector<1x8x8xf32>
    "tpu.trace_stop"() : () -> ()
    %76 = vector.extract_strided_slice %26 {offsets = [0, 0, 16], sizes = [1, 8, 8], strides = [1, 1, 1]} : vector<1x8x32xbf16> to vector<1x8x8xbf16>
    %77 = vector.extract_strided_slice %28 {offsets = [0, 0, 16], sizes = [1, 8, 8], strides = [1, 1, 1]} : vector<1x8x32xbf16> to vector<1x8x8xbf16>
    "tpu.trace_start"() <{level = 10 : i32, message = "bqd,bkd->bqk"}> : () -> ()
    %cst_23 = arith.constant dense<0.000000e+00> : vector<1x8x8xf32>
    %78 = tpu.matmul %76, %77, %cst_23 {dimension_numbers = #tpu.dot_dimension_numbers<[2], [2], [1], [1], [0, 0, 0, 1, 1, 1], [0], [0]>} : vector<1x8x8xbf16>, vector<1x8x8xbf16>, vector<1x8x8xf32> -> vector<1x8x8xf32>
    %cst_24 = arith.constant 0xFF800000 : f32
    "tpu.trace_stop"() : () -> ()
    %79 = vector.broadcast %cst_24 : f32 to vector<1x8x8xf32>
    %80 = arith.select %33, %78, %79 : vector<1x8x8xi1>, vector<1x8x8xf32>
    %81 = math.absf %80 : vector<1x8x8xf32>
    %cst_25 = arith.constant dense<0.000000e+00> : vector<1x8xf32>
    %82 = vector.multi_reduction <add>, %81, %cst_25 [2] : vector<1x8x8xf32> to vector<1x8xf32>
    %83 = vector.shape_cast %82 : vector<1x8xf32> to vector<1x8x1xf32>
    %cst_26 = arith.constant 9.99999996E-13 : f32
    %84 = vector.broadcast %cst_26 : f32 to vector<1x8x1xf32>
    %85 = arith.maximumf %83, %84 : vector<1x8x1xf32>
    %86 = tpu.reciprocal %85 {approx = true} : vector<1x8x1xf32> -> vector<1x8x1xf32>
    %87 = math.absf %85 : vector<1x8x1xf32>
    %cst_27 = arith.constant 0x7F800000 : f32
    %88 = vector.broadcast %cst_27 : f32 to vector<1x8x1xf32>
    %89 = arith.cmpf oeq, %87, %88 : vector<1x8x1xf32>
    %cst_28 = arith.constant 0.000000e+00 : f32
    %90 = vector.broadcast %cst_28 : f32 to vector<1x8x1xf32>
    %91 = arith.select %89, %90, %86 : vector<1x8x1xi1>, vector<1x8x1xf32>
    %92 = vector.broadcast %91 : vector<1x8x1xf32> to vector<1x8x8xf32>
    %93 = arith.mulf %80, %92 : vector<1x8x8xf32>
    %94 = arith.truncf %93 : vector<1x8x8xf32> to vector<1x8x8xbf16>
    %95 = vector.extract_strided_slice %29 {offsets = [0, 0, 16], sizes = [1, 8, 8], strides = [1, 1, 1]} : vector<1x8x32xbf16> to vector<1x8x8xbf16>
    "tpu.trace_start"() <{level = 10 : i32, message = "bqk,bkd->bqd"}> : () -> ()
    %cst_29 = arith.constant dense<0.000000e+00> : vector<1x8x8xf32>
    %96 = tpu.matmul %94, %95, %cst_29 {dimension_numbers = #tpu.dot_dimension_numbers<[2], [1], [1], [2], [0, 0, 0, 1, 1, 2], [0], [0]>} : vector<1x8x8xbf16>, vector<1x8x8xbf16>, vector<1x8x8xf32> -> vector<1x8x8xf32>
    "tpu.trace_stop"() : () -> ()
    %97 = vector.extract_strided_slice %26 {offsets = [0, 0, 24], sizes = [1, 8, 8], strides = [1, 1, 1]} : vector<1x8x32xbf16> to vector<1x8x8xbf16>
    %98 = vector.extract_strided_slice %28 {offsets = [0, 0, 24], sizes = [1, 8, 8], strides = [1, 1, 1]} : vector<1x8x32xbf16> to vector<1x8x8xbf16>
    "tpu.trace_start"() <{level = 10 : i32, message = "bqd,bkd->bqk"}> : () -> ()
    %cst_30 = arith.constant dense<0.000000e+00> : vector<1x8x8xf32>
    %99 = tpu.matmul %97, %98, %cst_30 {dimension_numbers = #tpu.dot_dimension_numbers<[2], [2], [1], [1], [0, 0, 0, 1, 1, 1], [0], [0]>} : vector<1x8x8xbf16>, vector<1x8x8xbf16>, vector<1x8x8xf32> -> vector<1x8x8xf32>
    %cst_31 = arith.constant 0xFF800000 : f32
    "tpu.trace_stop"() : () -> ()
    %100 = vector.broadcast %cst_31 : f32 to vector<1x8x8xf32>
    %101 = arith.select %33, %99, %100 : vector<1x8x8xi1>, vector<1x8x8xf32>
    %102 = math.absf %101 : vector<1x8x8xf32>
    %cst_32 = arith.constant dense<0.000000e+00> : vector<1x8xf32>
    %103 = vector.multi_reduction <add>, %102, %cst_32 [2] : vector<1x8x8xf32> to vector<1x8xf32>
    %104 = vector.shape_cast %103 : vector<1x8xf32> to vector<1x8x1xf32>
    %cst_33 = arith.constant 9.99999996E-13 : f32
    %105 = vector.broadcast %cst_33 : f32 to vector<1x8x1xf32>
    %106 = arith.maximumf %104, %105 : vector<1x8x1xf32>
    %107 = tpu.reciprocal %106 {approx = true} : vector<1x8x1xf32> -> vector<1x8x1xf32>
    %108 = math.absf %106 : vector<1x8x1xf32>
    %cst_34 = arith.constant 0x7F800000 : f32
    %109 = vector.broadcast %cst_34 : f32 to vector<1x8x1xf32>
    %110 = arith.cmpf oeq, %108, %109 : vector<1x8x1xf32>
    %cst_35 = arith.constant 0.000000e+00 : f32
    %111 = vector.broadcast %cst_35 : f32 to vector<1x8x1xf32>
    %112 = arith.select %110, %111, %107 : vector<1x8x1xi1>, vector<1x8x1xf32>
    %113 = vector.broadcast %112 : vector<1x8x1xf32> to vector<1x8x8xf32>
    %114 = arith.mulf %101, %113 : vector<1x8x8xf32>
    %115 = arith.truncf %114 : vector<1x8x8xf32> to vector<1x8x8xbf16>
    %116 = vector.extract_strided_slice %29 {offsets = [0, 0, 24], sizes = [1, 8, 8], strides = [1, 1, 1]} : vector<1x8x32xbf16> to vector<1x8x8xbf16>
    "tpu.trace_start"() <{level = 10 : i32, message = "bqk,bkd->bqd"}> : () -> ()
    %cst_36 = arith.constant dense<0.000000e+00> : vector<1x8x8xf32>
    %117 = tpu.matmul %115, %116, %cst_36 {dimension_numbers = #tpu.dot_dimension_numbers<[2], [1], [1], [2], [0, 0, 0, 1, 1, 2], [0], [0]>} : vector<1x8x8xbf16>, vector<1x8x8xbf16>, vector<1x8x8xf32> -> vector<1x8x8xf32>
    "tpu.trace_stop"() : () -> ()
    %118 = tpu.concatenate %54, %75, %96, %117 in 2 : vector<1x8x8xf32>, vector<1x8x8xf32>, vector<1x8x8xf32>, vector<1x8x8xf32> -> vector<1x8x32xf32>
    %119 = vector.shape_cast %118 : vector<1x8x32xf32> to vector<8x32xf32>
    %120 = arith.truncf %119 : vector<8x32xf32> to vector<8x32xbf16>
    %c0_37 = arith.constant 0 : index
    %c0_38 = arith.constant 0 : index
    %121 = vector.load %arg3[%c0_37, %c0_38] : memref<32x32xbf16, #tpu.memory_space<vmem>>, vector<32x32xbf16>
    %cst_39 = arith.constant dense<0.000000e+00> : vector<8x32xf32>
    %122 = tpu.matmul %120, %121, %cst_39 {dimension_numbers = #tpu.dot_dimension_numbers<[1], [0], [0], [1], [0, 0, 1, 1], [], []>} : vector<8x32xbf16>, vector<32x32xbf16>, vector<8x32xf32> -> vector<8x32xf32>
    %c0_40 = arith.constant 0 : index
    %c0_41 = arith.constant 0 : index
    %123 = vector.load %arg4[%c0_40, %c0_41] : memref<1x32xf32, #tpu.memory_space<vmem>>, vector<1x32xf32>
    %124 = vector.broadcast %123 : vector<1x32xf32> to vector<8x32xf32>
    %125 = arith.addf %122, %124 : vector<8x32xf32>
    %126 = vector.shape_cast %125 : vector<8x32xf32> to vector<1x8x32xf32>
    %127 = arith.addf %0, %126 : vector<1x8x32xf32>
    %128 = arith.mulf %127, %127 : vector<1x8x32xf32>
    %cst_42 = arith.constant dense<0.000000e+00> : vector<1x8xf32>
    %129 = vector.multi_reduction <add>, %128, %cst_42 [2] : vector<1x8x32xf32> to vector<1x8xf32>
    %130 = vector.shape_cast %129 : vector<1x8xf32> to vector<1x8x1xf32>
    %cst_43 = arith.constant 3.200000e+01 : f32
    %131 = vector.broadcast %cst_43 : f32 to vector<1x8x1xf32>
    %132 = arith.divf %130, %131 : vector<1x8x1xf32>
    %133 = math.rsqrt %132 : vector<1x8x1xf32>
    %134 = vector.broadcast %133 : vector<1x8x1xf32> to vector<1x8x32xf32>
    %135 = arith.mulf %127, %134 : vector<1x8x32xf32>
    %136 = vector.shape_cast %135 : vector<1x8x32xf32> to vector<8x32xf32>
    %137 = arith.truncf %136 : vector<8x32xf32> to vector<8x32xbf16>
    %c0_44 = arith.constant 0 : index
    %c0_45 = arith.constant 0 : index
    %138 = vector.load %arg5[%c0_44, %c0_45] : memref<32x128xbf16, #tpu.memory_space<vmem>>, vector<32x128xbf16>
    %cst_46 = arith.constant dense<0.000000e+00> : vector<8x128xf32>
    %139 = tpu.matmul %137, %138, %cst_46 {dimension_numbers = #tpu.dot_dimension_numbers<[1], [0], [0], [1], [0, 0, 1, 1], [], []>} : vector<8x32xbf16>, vector<32x128xbf16>, vector<8x128xf32> -> vector<8x128xf32>
    %c0_47 = arith.constant 0 : index
    %c0_48 = arith.constant 0 : index
    %140 = vector.load %arg6[%c0_47, %c0_48] : memref<1x128xf32, #tpu.memory_space<vmem>>, vector<1x128xf32>
    %141 = vector.broadcast %140 : vector<1x128xf32> to vector<8x128xf32>
    %142 = arith.addf %139, %141 : vector<8x128xf32>
    %cst_49 = arith.constant 0.000000e+00 : f32
    %143 = vector.broadcast %cst_49 : f32 to vector<8x128xf32>
    %144 = arith.maximumf %142, %143 : vector<8x128xf32>
    %145 = arith.truncf %144 : vector<8x128xf32> to vector<8x128xbf16>
    %c0_50 = arith.constant 0 : index
    %c0_51 = arith.constant 0 : index
    %146 = vector.load %arg7[%c0_50, %c0_51] : memref<128x32xbf16, #tpu.memory_space<vmem>>, vector<128x32xbf16>
    %cst_52 = arith.constant dense<0.000000e+00> : vector<8x32xf32>
    %147 = tpu.matmul %145, %146, %cst_52 {dimension_numbers = #tpu.dot_dimension_numbers<[1], [0], [0], [1], [0, 0, 1, 1], [], []>} : vector<8x128xbf16>, vector<128x32xbf16>, vector<8x32xf32> -> vector<8x32xf32>
    %c0_53 = arith.constant 0 : index
    %c0_54 = arith.constant 0 : index
    %148 = vector.load %arg8[%c0_53, %c0_54] : memref<1x32xf32, #tpu.memory_space<vmem>>, vector<1x32xf32>
    %149 = vector.broadcast %148 : vector<1x32xf32> to vector<8x32xf32>
    %150 = arith.addf %147, %149 : vector<8x32xf32>
    %151 = vector.shape_cast %150 : vector<8x32xf32> to vector<1x8x32xf32>
    %152 = arith.addf %127, %151 : vector<1x8x32xf32>
    %c0_55 = arith.constant 0 : index
    %c0_56 = arith.constant 0 : index
    %c0_57 = arith.constant 0 : index
    %153 = vector.load %arg9[%c0_55, %c0_56, %c0_57] : memref<1x8x32xf32, #tpu.memory_space<vmem>>, vector<1x8x32xf32>
    tpu.vector_store %arg9[%c0_55, %c0_56, %c0_57], %152 {strides = array<i32>} : memref<1x8x32xf32, #tpu.memory_space<vmem>>, vector<1x8x32xf32>,
    return
  }
  func.func @transform_0(%arg0: i32) -> (i32, i32, i32) {
    %c0_i32 = arith.constant 0 : i32
    %c0_i32_0 = arith.constant 0 : i32
    %c0_i32_1 = arith.constant 0 : i32
    return %arg0, %c0_i32, %c0_i32_0 : i32, i32, i32
  }
  func.func @transform_1(%arg0: i32) -> (i32, i32) {
    %c0_i32 = arith.constant 0 : i32
    %c0_i32_0 = arith.constant 0 : i32
    %c0_i32_1 = arith.constant 0 : i32
    return %c0_i32, %c0_i32_0 : i32, i32
  }
  func.func @transform_2(%arg0: i32) -> (i32, i32) {
    %c0_i32 = arith.constant 0 : i32
    %c0_i32_0 = arith.constant 0 : i32
    %c0_i32_1 = arith.constant 0 : i32
    return %c0_i32, %c0_i32_0 : i32, i32
  }
  func.func @transform_3(%arg0: i32) -> (i32, i32) {
    %c0_i32 = arith.constant 0 : i32
    %c0_i32_0 = arith.constant 0 : i32
    %c0_i32_1 = arith.constant 0 : i32
    return %c0_i32, %c0_i32_0 : i32, i32
  }
  func.func @transform_4(%arg0: i32) -> (i32, i32) {
    %c0_i32 = arith.constant 0 : i32
    %c0_i32_0 = arith.constant 0 : i32
    %c0_i32_1 = arith.constant 0 : i32
    return %c0_i32, %c0_i32_0 : i32, i32
  }
  func.func @transform_5(%arg0: i32) -> (i32, i32) {
    %c0_i32 = arith.constant 0 : i32
    %c0_i32_0 = arith.constant 0 : i32
    %c0_i32_1 = arith.constant 0 : i32
    return %c0_i32, %c0_i32_0 : i32, i32
  }
  func.func @transform_6(%arg0: i32) -> (i32, i32) {
    %c0_i32 = arith.constant 0 : i32
    %c0_i32_0 = arith.constant 0 : i32
    %c0_i32_1 = arith.constant 0 : i32
    return %c0_i32, %c0_i32_0 : i32, i32
  }
  func.func @transform_7(%arg0: i32) -> (i32, i32) {
    %c0_i32 = arith.constant 0 : i32
    %c0_i32_0 = arith.constant 0 : i32
    %c0_i32_1 = arith.constant 0 : i32
    return %c0_i32, %c0_i32_0 : i32, i32
  }
  func.func @transform_8(%arg0: i32) -> (i32, i32, i32) {
    %c0_i32 = arith.constant 0 : i32
    %c0_i32_0 = arith.constant 0 : i32
    %c0_i32_1 = arith.constant 0 : i32
    return %arg0, %c0_i32, %c0_i32_0 : i32, i32, i32
  }
}

</mosaic_0001>

<bundles_post_ra>
// kernel: tpu_custom_call.1
= control target key start
LH: loop header
LB: loop body
LE: loop exit
PB: predicated region body
PF: predicated region fallthrough
CT: control target
= control target key end

     0   :  { %13 = vsyncpa [#allocation3], 0  ;;  %s1794_s0 = inlined_call_operand.vmem [shape: f32[2,8,32], index: 0, kind: input, shape index: {}]   ;;  %s1795_s1 = inlined_call_operand.vmem [shape: bf16[32,96], index: 1, kind: input, shape index: {}]   ;;  %s1796_s2 = inlined_call_operand.vmem [shape: bf16[32,32], index: 2, kind: input, shape index: {}]   ;;  %s1797_s3 = inlined_call_operand.vmem [shape: f32[1,32], index: 3, kind: input, shape index: {}]   ;;  %s1798_s4 = inlined_call_operand.vmem [shape: bf16[32,128], index: 4, kind: input, shape index: {}]   ;;  %s1799_s5 = inlined_call_operand.vmem [shape: f32[1,128], index: 5, kind: input, shape index: {}]   ;;  %s1800_s6 = inlined_call_operand.vmem [shape: bf16[128,32], index: 6, kind: input, shape index: {}]   ;;  %s1801_s7 = inlined_call_operand.vmem [shape: f32[1,32], index: 7, kind: input, shape index: {}]   ;;  %s1802_s8 = inlined_call_operand.hbm [shape: f32[2,8,32], index: 8, kind: output, shape index: {}]  }
   0x1   :  { %15 = vsyncpa [#allocation3 + $0x1], 0  ;;  %s1547_s27 = smov 0   ;;  %s1549_s28 = smov 0  }
   0x2   :  { %s1551_s29 = smov 0   ;;  %s1553_s30 = smov 0  }
   0x3 LB: > { %s1568_s9 = sadd.s32 4294967295, %s1483_s30   ;;  %s1174_s10 = sadd.s32 4294967294, %s1483_s30   ;;  %s1483_s30 = sphi %s1553_s30, %s1808_s30   ;;  %s1479_s29 = sphi %s1551_s29, %s1807_s29   ;;  %s1475_s28 = sphi %s1549_s28, %s1806_s28   ;;  %s1471_s27 = sphi %s1547_s27, %s1805_s27  }
   0x4   : > { %s1572_s11 = sadd.s32 1, %s1483_s30   ;;  %s201_s12 = sadd.s32 1, %s1479_s29 }
   0x5   : > { %s198_s13 = ssub.s32 %s1483_s30, %s1572_s11  ;;  %p211_p0 = scmp.ne.s32.totalorder %s1479_s29, %s1475_s28 }
   0x6   : > { %p199_p1 = scmp.eq.s32.totalorder %s198_s13, 0  ;;  %p212_p2 = scmp.eq.s32.totalorder %s1568_s9, 1 }
   0x7   : > { %p217_p3 = scmp.ne.s32.totalorder %s1475_s28, %s1471_s27  ;;  %p218_p4 = scmp.eq.s32.totalorder %s1174_s10, 1 }
   0x8   : > { %s1583_s14 = scalar_select %p199_p1, %s1479_s29, %s201_s12  }
   0x9   : > { %p1585_p5 = por %p212_p2, %p211_p0  ;;  %p1589_p6 = por %p218_p4, %p217_p3 }
   0xa   : > { %p1177_p7 = scmp.ge.s32.totalorder %s1483_s30, 1  ;;  %p264_p8 = scmp.lt.s32.totalorder %s1483_s30, 3 }
   0xc   : > { %p265_p9 = pnand %p1177_p7, %p264_p8 }
   0xd   : > { %p297_p10 = scmp.lt.s32.totalorder (!%p265_p9), %s1568_s9, 1  ;;  %vm304_vm0 = vcmask (!%p265_p9), 261120   ;;  %v1393_v3 = vld [vmem:[%s1795_s1] sm:$0xff] (!%p265_p9)   ;;  %v1485_v4 = vmov (!%p265_p9), 0.0   ;;  %vm1486_vm1 = vmmov (!%p265_p9), 0   ;;  %v1394_v5 = vld [vmem:[%s1795_s1 + $0x8] sm:$0xff] (!%p265_p9)   ;;  %v379_v32 = vlaneseq (!%p265_p9) }
   0xe   : > { %268 = sbr.rel (%p265_p9) target bundleno = 2119 (0x847), region = 52  ;;  %1246 = vmatprep.subr.bf16.mxu0 (!%p265_p9), %v1485_v4  ;;  %1250 = vmatprep.mubr.msk.bf16.mxu0 (!%p265_p9), %vm1486_vm1, %v1485_v4  ;;  %vm387_vm2 = vcmask (!%p265_p9), 64512   ;;  %s1487_s26 = smov (!%p265_p9), 120   ;;  %vm452_vm5 = vcmask (!%p265_p9), 1043456   ;;  %vm840_vm9 = vcmask (!%p265_p9), 130048   ;;  %vm842_vm10 = vcmask (!%p265_p9), 195584  }
   0xf   : > { %1247 = vmatpush3.bf16.msra.mxu0 (!%p265_p9), %v1393_v3  ;;  %1266 = vmatprep.subr.bf16.mxu1 (!%p265_p9), %v1485_v4  ;;  %s1488_s10 = smov (!%p265_p9), 96   ;;  %s1489_s12 = smov (!%p265_p9), 112   ;;  %v380_v33 = vshrl.u32 (!%p265_p9), %v379_v32, 7  ;;  %v382_v34 = vand.u32 (!%p265_p9), 127, %v379_v32 }
  0x10   : > { %1248 = vmatprep.subr.bf16.mxu0 (!%p265_p9), %v1485_v4  ;;  %1268 = vmatprep.mubr.msk.bf16.mxu1 (!%p265_p9), %vm1486_vm1, %v1485_v4  ;;  %s1490_s13 = smov (!%p265_p9), 88   ;;  %s1493_s19 = smov (!%p265_p9), 72  }
  0x11   : > { %vm383_vm3 = vcmp.le.s32.totalorder (!%p265_p9), %v382_v34, %v380_v33  ;;  %s1494_s20 = smov (!%p265_p9), 56   ;;  %s1496_s22 = smov (!%p265_p9), 40  }
  0x12   : > { %s1497_s23 = smov (!%p265_p9), 48   ;;  %s1498_s24 = smov (!%p265_p9), 8  }
  0x13   : > { %1249 = vmatpush3.bf16.msra.mxu0 (!%p265_p9), %v1394_v5 }
  0x14   : > { %1254 = vmatprep.subr.bf16.mxu0 (!%p265_p9), %v1485_v4 }
  0x15   : > { %s298_s17 = scalar_select %p297_p10, %s1568_s9, 1 }
  0x17   : > { %s1179_s18 = sshll.u32 %s298_s17, 3  ;;  %s1491_s17 = smov 80  }
  0x18   : > { %s300_s21 = scalar_lea.vmem %s1794_s0, %s1179_s18  ;;  %s1492_s18 = smov 104  }
  0x19   : > { %v1600_v0 = vld [vmem:[%s300_s21] sm:$0xff]  ;;  %s1495_s21 = smov 64  }
  0x1a   : > { %v303_v1 = vmul.f32 %v1600_v0, %v1600_v0 }
  0x1c   : > { %v305_v2 = vsel %vm304_vm0, %v303_v1, 0.0 }
  0x1d   : > { %306 = vadd.xlane.f32.xlu0 %v305_v2 }
  0xaa   : > { %v307_v6 = vpop.xlane.xlu0 %306 }
  0xab   : > { %v309_v7 = vmul.f32 0.03125, %v307_v6 }
  0xad   : > { %1407 = vrsqrt.f32 %v309_v7 }
  0xb7   : > { %v1408_v8 = vpop.eup %1407 }
  0xb8   : > { %v311_v9 = vmul.f32 %v1408_v8, %v1600_v0 }
  0xba   : > { %v312_v10 = vpack.c.bf16 %v311_v9, %v311_v9 }
  0xbc   : > { %1251 = vmatmul.mubr.msk.bf16.vlgmr.msra.gmra.mrb[0].mxu0 %vm304_vm0, %v312_v10 }
  0xbd   : > { %1256 = vmatprep.mubr.msk.bf16.mxu0 %vm1486_vm1, %v1485_v4 }
 0x18f   : > { %v1623_v11 = vpop.f32.mrb[0].mxu0 }
 0x190   : > { %v372_v12 = vmax.f32 %v1623_v11, 0.0  ;;  %v1252_v13 = vpop.f32.mrb[1].mxu0  ;;  %v378_v56 = vpack.c.bf16 %v1623_v11, %v1623_v11 }
 0x191   : > { %v369_v14 = vpop.f32.mrb[2].mxu0 }
 0x192   : > { %v373_v15 = vmul.f32 1.442695, %v372_v12  ;;  %v1253_v16 = vpop.f32.mrb[3].mxu0 }
 0x194   : > { %1409 = vpow2.f32 %v373_v15 }
 0x19e   : > { %v1410_v17 = vpop.eup %1409 }
 0x19f   : > { %v377_v18 = vpack.c.bf16 %v1410_v17, %v1410_v17  ;;  %v375_v19 = vmul.f32 0.35355338, %v1410_v17 }
 0x1a1   : > { %499 = vrot.lane.b32.xlu1 %v377_v18, %s1487_s26  ;;  %v392_v20 = vsel %vm387_vm2, %v377_v18, 0  ;;  %v376_v21 = vpack.c.bf16 %v375_v19, %v375_v19 }
 0x1a2   : > { %1255 = vmatpush3.bf16.xpose.msra.mxu0 %v392_v20 }
 0x1a3   : > { %385 = vrot.lane.b32.xlu0 %v376_v21, %s1488_s10  ;;  %1260 = vmatprep.subr.bf16.mxu0 %v1485_v4  ;;  %s1501_s10 = smov [#allocation2]  }
 0x1a5   : > { %609 = vrot.lane.b32.xlu1 %v377_v18, %s1489_s12  ;;  %s1425_s12 = sshll.u32 %s1501_s10, 4  ;;  %s1426_s12 = int_to_ptr.vmem [resolvable:$false] %s1425_s12 }
 0x1a9   : > { %496 = vrot.lane.b32.xlu1 %v376_v21, %s1490_s13  ;;  %s1499_s13 = smov 16  }
 0x1ad   : > { %607 = vrot.lane.b32.xlu1 %v376_v21, %s1491_s17  ;;  %s1500_s17 = smov 24  }
 0x1b1   : > { %719 = vrot.lane.b32.xlu1 %v377_v18, %s1492_s18 }
 0x1b5   : > { %717 = vrot.lane.b32.xlu1 %v376_v21, %s1493_s19 }
 0x213   : > { %v500_v22 = vpop.permute.xlu1 %499 }
 0x214   : > { %v505_v23 = vsel %vm387_vm2, %v500_v22, 0 }
 0x215   : > { %1267 = vmatpush3.bf16.xpose.msra.mxu1 %v505_v23  ;;  %v386_v24 = vpop.permute.xlu0 %385 }
 0x216   : > { %1257 = vmatmul.mubr.msk.bf16.vlgmr.msra.gmra.mrb[4].mxu0 %vm387_vm2, %v386_v24  ;;  %1278 = vmatprep.subr.bf16.mxu1 %v1485_v4 }
 0x217   : > { %v610_v25 = vpop.permute.xlu1 %609  ;;  %1262 = vmatprep.mubr.msk.bf16.mxu0 %vm1486_vm1, %v1485_v4 }
 0x218   : > { %v615_v27 = vsel %vm387_vm2, %v610_v25, 0 }
 0x21b   : > { %v497_v26 = vpop.permute.xlu1 %496 }
 0x21c   : > { %1269 = vmatmul.mubr.msk.bf16.vlgmr.msra.gmra.mrb[0].mxu1 %vm387_vm2, %v497_v26 }
 0x21d   : > { %1279 = vmatpush3.bf16.xpose.msra.mxu1 %v615_v27  ;;  %1280 = vmatprep.mubr.msk.bf16.mxu1 %vm1486_vm1, %v1485_v4 }
 0x21e   : > { %1290 = vmatprep.subr.bf16.mxu1 %v1485_v4 }
 0x21f   : > { %v608_v28 = vpop.permute.xlu1 %607 }
 0x223   : > { %v720_v29 = vpop.permute.xlu1 %719 }
 0x224   : > { %v725_v30 = vsel %vm387_vm2, %v720_v29, 0  ;;  %1281 = vmatmul.mubr.msk.bf16.vlgmr.msra.gmra.mrb[4].mxu1 %vm387_vm2, %v608_v28 }
 0x225   : > { %1291 = vmatpush3.bf16.xpose.msra.mxu1 %v725_v30  ;;  %1292 = vmatprep.mubr.msk.bf16.mxu1 %vm1486_vm1, %v1485_v4 }
 0x226   : > { %1302 = vmatprep.subr.bf16.mxu1 %v1485_v4 }
 0x227   : > { %v718_v31 = vpop.permute.xlu1 %717 }
 0x22c   : > { %1293 = vmatmul.mubr.msk.bf16.vlgmr.msra.gmra.mrb[8].mxu1 %vm387_vm2, %v718_v31 }
 0x22d   : > { %1306 = vmatprep.mubr.msk.bf16.mxu1 %vm1486_vm1, %v1485_v4 }
 0x2e9   : > { %v428_v35 = vpop.f32.mrb[4].mxu0 }
 0x2ea   : > { %v434_v36 = vsel %vm383_vm3, %v428_v35, -inf  ;;  %v1258_v37 = vpop.f32.mrb[5].mxu0 }
 0x2eb   : > { %v435_v38 = vand.u32 2147483647, %v434_v36  ;;  %v431_v39 = vpop.f32.mrb[6].mxu0 }
 0x2ec   : > { %v1259_v40 = vpop.f32.mrb[7].mxu0 }
 0x2ed   : > { %v436_v41 = vsel %vm387_vm2, %v435_v38, 0.0 }
 0x2ee   : > { %437 = vadd.xlane.f32.xlu1 %v436_v41 }
 0x2ef   : > { %v541_v42 = vpop.f32.mrb[0].mxu1 }
 0x2f0   : > { %v547_v43 = vsel %vm383_vm3, %v541_v42, -inf  ;;  %v1270_v44 = vpop.f32.mrb[1].mxu1 }
 0x2f1   : > { %v548_v45 = vand.u32 2147483647, %v547_v43  ;;  %v544_v46 = vpop.f32.mrb[2].mxu1 }
 0x2f2   : > { %v1271_v47 = vpop.f32.mrb[3].mxu1  ;;  %v1395_v46 = vld [vmem:[%s1796_s2] sm:$0xff]  }
 0x2f3   : > { %v549_v48 = vsel %vm387_vm2, %v548_v45, 0.0  ;;  %1303 = vmatpush3.bf16.msra.mxu1 %v1395_v46  ;;  %v1396_v47 = vld [vmem:[%s1796_s2 + $0x8] sm:$0xff]  }
 0x2f4   : > { %550 = vadd.xlane.f32.xlu0 %v549_v48  ;;  %1304 = vmatprep.subr.bf16.mxu1 %v1485_v4 }
 0x2f7   : > { %v651_v49 = vpop.f32.mrb[4].mxu1  ;;  %1305 = vmatpush3.bf16.msra.mxu1 %v1396_v47 }
 0x2f8   : > { %v1651_v50 = vsel %vm383_vm3, %v651_v49, -inf  ;;  %v1282_v51 = vpop.f32.mrb[5].mxu1  ;;  %1318 = vmatprep.subr.bf16.mxu1 %v1485_v4 }
 0x2f9   : > { %v658_v52 = vand.u32 2147483647, %v1651_v50  ;;  %v654_v53 = vpop.f32.mrb[6].mxu1 }
 0x2fa   : > { %v1283_v54 = vpop.f32.mrb[7].mxu1 }
 0x2fb   : > { %v659_v55 = vsel %vm387_vm2, %v658_v52, 0.0 }
 0x2fc   : > { %660 = vadd.xlane.f32.xlu0 %v659_v55 }
 0x2ff   : > { %v761_v57 = vpop.f32.mrb[8].mxu1  ;;  %559 = vrot.lane.b32.xlu1 %v378_v56, %s1494_s20  ;;  %s1209_s20 = sshll.u32 %s1568_s9, 7 }
 0x300   : > { %v1294_v58 = vpop.f32.mrb[9].mxu1  ;;  %v1658_v61 = vsel %vm383_vm3, %v761_v57, -inf  ;;  %s1751_s25 = scalar_lea.hbm %s1802_s8, %s1209_s20 }
 0x301   : > { %v764_v59 = vpop.f32.mrb[10].mxu1  ;;  %v768_v62 = vand.u32 2147483647, %v1658_v61 }
 0x302   : > { %v1295_v60 = vpop.f32.mrb[11].mxu1 }
 0x303   : > { %v769_v63 = vsel %vm387_vm2, %v768_v62, 0.0 }
 0x312   : > { %447 = vrot.lane.b32.xlu0 %v378_v56, %s1495_s21 }
 0x316   : > { %779 = vrot.lane.b32.xlu0 %v378_v56, %s1496_s22 }
 0x323   : > { %770 = vadd.xlane.f32.xlu1 %v769_v63  ;;  %v1191_v63 = vld [vmem:[%s1797_s3] ss:$0 sm:$0xff] }
 0x334   : > { %669 = vrot.lane.b32.xlu1 %v378_v56, %s1497_s23 }
 0x37b   : > { %v438_v1 = vpop.xlane.xlu1 %437 }
 0x37c   : > { %v439_v2 = vmax.f32 %v438_v1, 1e-12 }
 0x37e   : > { %1411 = vrcp.f32 %v439_v2  ;;  %v441_v6 = vand.u32 2147483647, %v439_v2 }
 0x37f   : > { %v560_v15 = vpop.permute.xlu1 %559 }
 0x380   : > { %vm442_vm4 = vcmp.eq.f32.partialorder %v441_v6, inf  ;;  %v565_v18 = vsel %vm452_vm5, %v560_v15, 0  ;;  %v1403_v15 = vld [vmem:[%s1800_s6 + $0x20] sm:$0xff]  }
 0x381   : > { %v551_v3 = vpop.xlane.xlu0 %550 }
 0x382   : > { %v552_v5 = vmax.f32 %v551_v3, 1e-12 }
 0x384   : > { %1413 = vrcp.f32 %v552_v5  ;;  %v554_v11 = vand.u32 2147483647, %v552_v5 }
 0x386   : > { %vm555_vm6 = vcmp.eq.f32.partialorder %v554_v11, inf  ;;  %v1398_v11 = vld [vmem:[%s1798_s4 + $0x8] sm:$0xff]  }
 0x388   : > { %v1412_v7 = vpop.eup %1411 }
 0x389   : > { %v443_v8 = vsel %vm442_vm4, 0.0, %v1412_v7  ;;  %v661_v9 = vpop.xlane.xlu0 %660 }
 0x38a   : > { %v444_v10 = vmul.f32 %v443_v8, %v434_v36  ;;  %v662_v21 = vmax.f32 %v661_v9, 1e-12 }
 0x38c   : > { %v445_v16 = vpack.c.bf16 %v444_v10, %v444_v10  ;;  %1415 = vrcp.f32 %v662_v21  ;;  %v664_v22 = vand.u32 2147483647, %v662_v21  ;;  %v1397_v10 = vld [vmem:[%s1798_s4] sm:$0xff]  }
 0x38d   : > { %v448_v12 = vpop.permute.xlu0 %447 }
 0x38e   : > { %v1414_v13 = vpop.eup %1413  ;;  %v454_v14 = vsel %vm452_vm5, %v448_v12, 0  ;;  %vm665_vm7 = vcmp.eq.f32.partialorder %v664_v22, inf  ;;  %v1400_v12 = vld [vmem:[%s1800_s6 + $0x8] sm:$0xff]   ;;  %v1405_v22 = vld [vmem:[%s1800_s6 + $0x30] sm:$0xff]  }
 0x38f   : > { %1261 = vmatpush3.bf16.msra.mxu0 %v454_v14  ;;  %v556_v17 = vsel %vm555_vm6, 0.0, %v1414_v13  ;;  %v1401_v13 = vld [vmem:[%s1800_s6 + $0x10] sm:$0xff]   ;;  %v1402_v14 = vld [vmem:[%s1800_s6 + $0x18] sm:$0xff]  }
 0x390   : > { %1272 = vmatprep.subr.bf16.mxu0 %v1485_v4  ;;  %v557_v19 = vmul.f32 %v556_v17, %v547_v43 }
 0x391   : > { %v780_v30 = vpop.permute.xlu0 %779 }
 0x392   : > { %1263 = vmatmul.mubr.msk.bf16.vlgmr.msra.gmra.mrb[8].mxu0 %vm387_vm2, %v445_v16  ;;  %v558_v20 = vpack.c.bf16 %v557_v19, %v557_v19  ;;  %v785_v32 = vsel %vm452_vm5, %v780_v30, 0  ;;  %v1404_v16 = vld [vmem:[%s1800_s6 + $0x28] sm:$0xff]  }
 0x393   : > { %1273 = vmatpush3.bf16.msra.mxu0 %v565_v18  ;;  %1274 = vmatprep.mubr.msk.bf16.mxu0 %vm1486_vm1, %v1485_v4 }
 0x394   : > { %1284 = vmatprep.subr.bf16.mxu0 %v1485_v4 }
 0x396   : > { %v1416_v23 = vpop.eup %1415 }
 0x397   : > { %v666_v24 = vsel %vm665_vm7, 0.0, %v1416_v23  ;;  %v1406_v23 = vld [vmem:[%s1800_s6 + $0x38] sm:$0xff]  }
 0x398   : > { %v667_v27 = vmul.f32 %v666_v24, %v1651_v50  ;;  %v1195_v24 = vld [vmem:[%s1799_s5] ss:$0 sm:$0xff] }
 0x39a   : > { %1275 = vmatmul.mubr.msk.bf16.vlgmr.msra.gmra.mrb[12].mxu0 %vm387_vm2, %v558_v20  ;;  %v668_v31 = vpack.c.bf16 %v667_v27, %v667_v27 }
 0x39b   : > { %1286 = vmatprep.mubr.msk.bf16.mxu0 %vm1486_vm1, %v1485_v4 }
 0x3b0   : > { %v771_v25 = vpop.xlane.xlu1 %770 }
 0x3b1   : > { %v772_v26 = vmax.f32 %v771_v25, 1e-12 }
 0x3b3   : > { %1417 = vrcp.f32 %v772_v26  ;;  %v774_v33 = vand.u32 2147483647, %v772_v26 }
 0x3b4   : > { %v670_v28 = vpop.permute.xlu1 %669 }
 0x3b5   : > { %v675_v29 = vsel %vm452_vm5, %v670_v28, 0  ;;  %vm775_vm8 = vcmp.eq.f32.partialorder %v774_v33, inf }
 0x3b6   : > { %1285 = vmatpush3.bf16.msra.mxu0 %v675_v29 }
 0x3b7   : > { %1296 = vmatprep.subr.bf16.mxu0 %v1485_v4 }
 0x3b9   : > { %1287 = vmatmul.mubr.msk.bf16.vlgmr.msra.gmra.mrb[16].mxu0 %vm387_vm2, %v668_v31 }
 0x3ba   : > { %1297 = vmatpush3.bf16.msra.mxu0 %v785_v32  ;;  %1298 = vmatprep.mubr.msk.bf16.mxu0 %vm1486_vm1, %v1485_v4 }
 0x3bb   : > { %1310 = vmatprep.subr.bf16.mxu0 %v1485_v4 }
 0x3bd   : > { %v1418_v34 = vpop.eup %1417 }
 0x3be   : > { %v776_v35 = vsel %vm775_vm8, 0.0, %v1418_v34 }
 0x3bf   : > { %v777_v36 = vmul.f32 %v776_v35, %v1658_v61 }
 0x3c1   : > { %v778_v37 = vpack.c.bf16 %v777_v36, %v777_v36 }
 0x3c3   : > { %1299 = vmatmul.mubr.msk.bf16.vlgmr.msra.gmra.mrb[20].mxu0 %vm387_vm2, %v778_v37 }
 0x3c4   : > { %1314 = vmatprep.mubr.msk.bf16.mxu0 %vm1486_vm1, %v1485_v4  ;;  %1311 = vmatpush3.bf16.msra.mxu0 %v1397_v10 }
 0x3c5   : > { %1312 = vmatprep.subr.bf16.mxu0 %v1485_v4 }
 0x3c8   : > { %1313 = vmatpush3.bf16.msra.mxu0 %v1398_v11 }
 0x465   : > { %v490_v38 = vpop.f32.mrb[8].mxu0 }
 0x466   : > { %v1264_v39 = vpop.f32.mrb[9].mxu0 }
 0x467   : > { %v493_v40 = vpop.f32.mrb[10].mxu0 }
 0x468   : > { %v1265_v41 = vpop.f32.mrb[11].mxu0 }
 0x46d   : > { %v601_v42 = vpop.f32.mrb[12].mxu0 }
 0x46e   : > { %828 = vrot.lane.b32.xlu1 %v601_v42, %s1498_s24  ;;  %v1276_v43 = vpop.f32.mrb[13].mxu0 }
 0x46f   : > { %v604_v44 = vpop.f32.mrb[14].mxu0 }
 0x470   : > { %v1277_v45 = vpop.f32.mrb[15].mxu0 }
 0x48c   : > { %v711_v48 = vpop.f32.mrb[16].mxu0 }
 0x48d   : > { %832 = vrot.lane.b32.xlu0 %v711_v48, %s1499_s13  ;;  %v1288_v49 = vpop.f32.mrb[17].mxu0  ;;  %s294_s13 = sand.u32 1, %s1475_s28  }
 0x48e   : > { %v714_v50 = vpop.f32.mrb[18].mxu0  ;;  %s1102_s9 = scalar_lea.sflag [#allocation3], %s294_s13 }
 0x48f   : > { %v1289_v51 = vpop.f32.mrb[19].mxu0 }
 0x496   : > { %v821_v52 = vpop.f32.mrb[20].mxu0 }
 0x497   : > { %836 = vrot.lane.b32.xlu1 %v821_v52, %s1500_s17  ;;  %v1300_v53 = vpop.f32.mrb[21].mxu0  ;;  %s1178_s17 = sshll.u32 %s294_s13, 3 }
 0x498   : > { %v824_v54 = vpop.f32.mrb[22].mxu0  ;;  %s296_s21 = scalar_lea.vmem [#allocation2], %s1178_s17  ;;  %s1427_s17 = scalar_lea.vmem %s1426_s12, 256 }
 0x499   : > { %v1301_v55 = vpop.f32.mrb[23].mxu0  ;;  %s1115_s22 = sshll.u32 %s296_s21, 4  ;;  %s1753_s22 = int_to_ptr.vmem [resolvable:$true] %s1115_s22 }
 0x49a   : > { %s1421_s26 = scalar_lea.vmem %s1753_s22, 128  ;;  %p1428_p0 = scmp.lt.s32.totalorder %s1753_s22, %s1426_s12 }
 0x49b   : > { %p1422_p11 = scmp.ne.s32.totalorder %s1753_s22, %s1421_s26  ;;  %p1429_p1 = scmp.lt.s32.totalorder %s1427_s17, %s1421_s26 }
 0x49d   : > { %p1423_p12 = pnand %p1422_p11, %p1585_p5  ;;  %p1430_p2 = por %p1429_p1, %p1428_p0 }
 0x49f   : > { %p1424_p13 = pneg %p1423_p12 }
 0x4a1   : > { %p1431_p3 = pnand %p1430_p2, %p1424_p13 }
 0x4e0   : > { %v829_v56 = vpop.permute.xlu1 %828 }
 0x4e1   : > { %v839_v58 = vsel %vm387_vm2, %v490_v38, %v829_v56 }
 0x4ff   : > { %v833_v57 = vpop.permute.xlu0 %832 }
 0x500   : > { %v841_v59 = vsel %vm840_vm9, %v839_v58, %v833_v57 }
 0x509   : > { %v837_v60 = vpop.permute.xlu1 %836 }
 0x50a   : > { %v843_v61 = vsel %vm842_vm10, %v841_v59, %v837_v60 }
 0x50b   : > { %v844_v62 = vpack.c.bf16 %v843_v61, %v843_v61 }
 0x50d   : > { %1307 = vmatmul.mubr.msk.bf16.vlgmr.msra.gmra.mrb[12].mxu1 %vm304_vm0, %v844_v62 }
 0x50e   : > { %1334 = vmatprep.mubr.msk.bf16.mxu1 %vm1486_vm1, %v1485_v4 }
 0x5e0   : > { %v905_v1 = vpop.f32.mrb[12].mxu1 }
 0x5e1   : > { %v906_v2 = vadd.f32 %v1191_v63, %v905_v1  ;;  %v1308_v3 = vpop.f32.mrb[13].mxu1 }
 0x5e2   : > { %v908_v5 = vpop.f32.mrb[14].mxu1 }
 0x5e3   : > { %v911_v6 = vadd.f32 %v906_v2, %v1600_v0  ;;  %v1309_v7 = vpop.f32.mrb[15].mxu1  ;;  %v1399_v0 = vld [vmem:[%s1800_s6] sm:$0xff]  }
 0x5e4   : > { %1319 = vmatpush3.bf16.msra.mxu1 %v1399_v0 }
 0x5e5   : > { %v912_v8 = vmul.f32 %v911_v6, %v911_v6  ;;  %1320 = vmatprep.subr.bf16.mxu1 %v1485_v4 }
 0x5e7   : > { %v913_v9 = vsel %vm304_vm0, %v912_v8, 0.0 }
 0x5e8   : > { %914 = vadd.xlane.f32.xlu0 %v913_v9  ;;  %1321 = vmatpush3.bf16.msra.mxu1 %v1400_v12 }
 0x5e9   : > { %1322 = vmatprep.subr.bf16.mxu1 %v1485_v4 }
 0x5ec   : > { %1323 = vmatpush3.bf16.msra.mxu1 %v1401_v13 }
 0x5ed   : > { %1324 = vmatprep.subr.bf16.mxu1 %v1485_v4 }
 0x5f0   : > { %1325 = vmatpush3.bf16.msra.mxu1 %v1402_v14 }
 0x5f1   : > { %1326 = vmatprep.subr.bf16.mxu1 %v1485_v4 }
 0x5f4   : > { %1327 = vmatpush3.bf16.msra.mxu1 %v1403_v15 }
 0x5f5   : > { %1328 = vmatprep.subr.bf16.mxu1 %v1485_v4 }
 0x5f8   : > { %1329 = vmatpush3.bf16.msra.mxu1 %v1404_v16 }
 0x5f9   : > { %1330 = vmatprep.subr.bf16.mxu1 %v1485_v4 }
 0x5fc   : > { %1331 = vmatpush3.bf16.msra.mxu1 %v1405_v22 }
 0x5fd   : > { %1332 = vmatprep.subr.bf16.mxu1 %v1485_v4  ;;  %v1199_v4 = vld [vmem:[%s1801_s7] ss:$0 sm:$0xff] }
 0x600   : > { %1333 = vmatpush3.bf16.msra.mxu1 %v1406_v23 }
 0x675   : > { %v915_v17 = vpop.xlane.xlu0 %914 }
 0x676   : > { %v916_v18 = vmul.f32 0.03125, %v915_v17 }
 0x678   : > { %1419 = vrsqrt.f32 %v916_v18 }
 0x682   : > { %v1420_v19 = vpop.eup %1419 }
 0x683   : > { %v918_v20 = vmul.f32 %v1420_v19, %v911_v6 }
 0x685   : > { %v919_v21 = vpack.c.bf16 %v918_v20, %v918_v20 }
 0x687   : > { %1315 = vmatmul.mubr.msk.bf16.vlgmr.msra.gmra.mrb[24].mxu0 %vm304_vm0, %v919_v21 }
 0x75a   : > { %v980_v25 = vpop.f32.mrb[24].mxu0 }
 0x75b   : > { %v981_v26 = vadd.f32 %v1195_v24, %v980_v25  ;;  %v1316_v27 = vpop.f32.mrb[25].mxu0 }
 0x75c   : > { %v983_v28 = vpop.f32.mrb[26].mxu0 }
 0x75d   : > { %v986_v29 = vmax.f32 %v981_v26, 0.0  ;;  %v1317_v30 = vpop.f32.mrb[27].mxu0 }
 0x75f   : > { %v987_v31 = vpack.c.bf16 %v986_v29, %v986_v29 }
 0x761   : > { %1335 = vmatmul.mubr.bf16.vlgmr.msra.gmra.mrb[16].mxu1 %v987_v31 }
 0x834   : > { %v1093_v32 = vpop.f32.mrb[16].mxu1 }
 0x835   : > { %v1094_v33 = vadd.f32 %v1199_v4, %v1093_v32  ;;  %v1336_v34 = vpop.f32.mrb[17].mxu1 }
 0x836   : > { %v1096_v35 = vpop.f32.mrb[18].mxu1 }
 0x837   : > { %v1099_v36 = vadd.f32 %v1094_v33, %v911_v6  ;;  %v1337_v37 = vpop.f32.mrb[19].mxu1 }
 0x839   : > { %1100 = vst.msk [vmem:[%s296_s21] sm:$0xff] %vm304_vm0, %v1099_v36 }
 0x83a   : > { %1434 = shalt.err (!%p1431_p3)
}
 0x83b   : > { %s1435_s13 = scalar_lea.hbm %s1751_s25, 128  ;;  %s1439_s20 = scalar_lea.hbm %s1802_s8, 256 }
 0x83c   : > { %p1436_p4 = scmp.ne.s32.totalorder %s1751_s25, %s1435_s13  ;;  %p1440_p9 = scmp.lt.u32.totalorder %s1751_s25, %s1802_s8 }
 0x83d   : > { %p1441_p10 = scmp.lt.u32.totalorder %s1439_s20, %s1435_s13  ;;  %p1443_p12 = scmp.lt.u32.totalorder %s1435_s13, %s1751_s25 }
 0x83e   : > { %p1437_p7 = pnand %p1436_p4, %p1585_p5 }
 0x83f   : > { %p1442_p11 = por %p1441_p10, %p1440_p9 }
 0x840   : > { %p1438_p8 = pneg %p1437_p7 }
 0x841   : > { %p1444_p13 = por %p1443_p12, %p1442_p11 }
 0x843   : > { %p1445_p0 = pnand %p1444_p13, %p1438_p8 }
 0x845   : > { %1448 = shalt.err (!%p1445_p0)
}
 0x846   : > { %1338 = dma.vmem_to_hbm [thread:$0]  (%p1585_p5), %s1753_s22, 128, %s1751_s25, %s1102_s9  }
 0x847 PF: > { %p1344_p1 = scmp.ge.s32.totalorder %s1483_s30, 2  ;;  %s1127_s24 = sand.u32 1, %s1471_s27  }
 0x848   : > { %s1128_s26 = scalar_lea.sflag [#allocation3], %s1127_s24 }
 0x849   : > { %p1341_p2 = pnand %p1344_p1, %p1589_p6 }
 0x84b   : > { %1466 = dma.done.wait (!%p1341_p2), %s1128_s26, 128  }
 0x84c   : > { %1468 = vsyncadd (!%p1341_p2), %s1128_s26, 4294967168  ;;  %p18_p3 = scmp.ge.s32.totalorder %s1572_s11, 4   ;;  %s1805_s27 = smov %s1475_s28 }
 0x84d   : > { %s1806_s28 = smov %s1479_s29  ;;  %s1807_s29 = smov %s1583_s14 }
 0x84e   : > { %s1808_s30 = smov %s1572_s11  ;;  %20 = sbr.rel (!%p18_p3) target bundleno = 3 (0x3), region = 87 }
 0x855   :  { %1133 = vsyncpa [#allocation3], 1 }
 0x856   :  { %1135 = vsyncpa [#allocation3 + $0x1], 1 }

</bundles_post_ra>
